<compile_context>
chip_gen: v7x
topology: tpu7x:2x2x1
jax: 0.10.0
libtpu: 0.0.40
codegen_flags: <defaults>
</compile_context>

<pallas_src>
import jax
import jax.numpy as jnp
from jax.experimental import pallas as pl
from jax.experimental.pallas import tpu as pltpu

LANE = 128


def _round_up(n, m):
    return ((n + m - 1) // m) * m


def _multitask_mlp_kernel(task_ref, x_ref, w1_ref, b1_ref, w2_ref, b2_ref,
                          w3_ref, b3_ref, o_ref):
    # task_ref (SMEM scalar) is consumed by the index_maps to select the
    # per-task weight blocks; the body itself does not need it.
    del task_ref
    # VPU cast to the MXU compute dtype (no-op if x was pre-cast in the wrapper).
    x = x_ref[...].astype(w1_ref.dtype)
    # shared_hidden: Linear + ReLU (bf16 MXU matmul, f32 accumulate/epilogue)
    h = jnp.dot(x, w1_ref[...], preferred_element_type=jnp.float32)
    h = jnp.maximum(h + b1_ref[...], 0.0)
    # personalized_hidden[task_id - 1]: Linear + ReLU
    h = jnp.dot(h.astype(w2_ref.dtype), w2_ref[...],
                preferred_element_type=jnp.float32)
    h = jnp.maximum(h + b2_ref[...], 0.0)
    # output_heads[task_id - 1]: Linear (no activation)
    out = jnp.dot(h.astype(w3_ref.dtype), w3_ref[...],
                  preferred_element_type=jnp.float32) + b3_ref[...]
    o_ref[...] = out.astype(o_ref.dtype)


def prepare_params(params, compute_dtype=jnp.bfloat16):
    """One-time prep: stack per-task weights, zero-pad feature dims to the
    128-lane width, cast matmul operands to bf16 (biases stay f32)."""
    w1, b1 = params["shared_hidden"]
    in_dim, shared_dim = w1.shape
    pers_dim = params["personalized_hidden"][0][0].shape[1]
    out_dim = params["output_heads"][0][0].shape[1]

    in_p = _round_up(in_dim, LANE)
    sh_p = _round_up(shared_dim, LANE)
    pe_p = _round_up(pers_dim, LANE)
    out_p = _round_up(out_dim, LANE)

    def pad2(a, r, c):
        return jnp.pad(a, ((0, r - a.shape[0]), (0, c - a.shape[1])))

    w2 = jnp.stack([pad2(w, sh_p, pe_p) for w, _ in params["personalized_hidden"]])
    b2 = jnp.stack([pad2(b, 1, pe_p) for _, b in params["personalized_hidden"]])
    w3 = jnp.stack([pad2(w, pe_p, out_p) for w, _ in params["output_heads"]])
    b3 = jnp.stack([pad2(b, 1, out_p) for _, b in params["output_heads"]])

    return {
        "dims": (in_dim, shared_dim, pers_dim, out_dim),
        "padded_dims": (in_p, sh_p, pe_p, out_p),
        "n_tasks": len(params["output_heads"]),
        "w1": pad2(w1, in_p, sh_p).astype(compute_dtype),
        "b1": pad2(b1, 1, sh_p).astype(jnp.float32),
        "w2": w2.astype(compute_dtype),
        "b2": b2.astype(jnp.float32),
        "w3": w3.astype(compute_dtype),
        "b3": b3.astype(jnp.float32),
    }


def _pick_tm(batch, sh_p, pe_p):
    """Adaptive row tile: sublane-packed for small batches, >=2 tiles for large,
    capped so the fused chain's f32 intermediates stay ~2 MiB."""
    batch = max(int(batch), 1)
    if batch <= 128:
        tm = _round_up(batch, 16)               # bf16 sublane pack (16 rows)
    else:
        tm = min(256, _round_up(-(-batch // 2), 16))  # >=2 tiles, <=256 rows
    cap = (2 * 1024 * 1024) // (4 * max(sh_p, pe_p))  # tm*max(sh_p,pe_p)*4B <= 2MiB
    cap = max(16, (cap // 16) * 16)
    return max(16, min(tm, cap))


def multitask_nn_forward(x, prepared, task_id, *, out_dtype=jnp.float32):
    """Pallas implementation of MultiTaskNN.forward(x, task_id).

    task_id is 1-based (as in the PyTorch module) and must be a concrete Python
    int; the compiled kernel is the same for every task (selection happens via
    a prefetched SMEM scalar)."""
    n_tasks = prepared["n_tasks"]
    if not (0 < task_id <= n_tasks):
        raise ValueError(f"Invalid task_id: should be between 0 and {n_tasks}")

    in_dim, _, _, out_dim = prepared["dims"]
    in_p, sh_p, pe_p, out_p = prepared["padded_dims"]
    w1, b1, w2, b2, w3, b3 = (prepared[k] for k in ("w1", "b1", "w2", "b2", "w3", "b3"))

    batch = x.shape[0]
    tm = _pick_tm(batch, sh_p, pe_p)
    batch_p = _round_up(max(batch, 1), tm)
    grid = (batch_p // tm,)

    if batch_p != batch or in_p != in_dim:
        # pad + bf16 cast fuse into a single XLA pass (read f32 once, write bf16 once)
        x_in = jnp.pad(x, ((0, batch_p - batch), (0, in_p - in_dim))).astype(w1.dtype)
    else:
        # already tile-aligned: no wrapper pass at all; cast happens on the VPU
        x_in = x

    task_idx = jnp.asarray([task_id - 1], dtype=jnp.int32)

    grid_spec = pltpu.PrefetchScalarGridSpec(
        num_scalar_prefetch=1,
        grid=grid,
        in_specs=[
            # activations: tiled over the batch grid axis (auto double-buffered)
            pl.BlockSpec((tm, in_p), lambda i, t: (i, 0)),
            # shared weights: constant index_map -> VMEM-resident, no re-DMA
            pl.BlockSpec((in_p, sh_p), lambda i, t: (0, 0)),
            pl.BlockSpec((1, sh_p), lambda i, t: (0, 0)),
            # per-task weights: leading dim selected by the prefetched task id;
            # only the chosen task's blocks are ever DMA'd.
            pl.BlockSpec((None, sh_p, pe_p), lambda i, t: (t[0], 0, 0)),
            pl.BlockSpec((None, 1, pe_p), lambda i, t: (t[0], 0, 0)),
            pl.BlockSpec((None, pe_p, out_p), lambda i, t: (t[0], 0, 0)),
            pl.BlockSpec((None, 1, out_p), lambda i, t: (t[0], 0, 0)),
        ],
        out_specs=pl.BlockSpec((tm, out_p), lambda i, t: (i, 0)),
    )

    # VMEM budget from the actual footprint (x2 for default double-buffering),
    # floored at the 16 MiB v5e scoped default, capped at 48 MiB (v7x-safe).
    w_bytes = ((in_p * sh_p + sh_p * pe_p + pe_p * out_p) * w1.dtype.itemsize
               + (sh_p + pe_p + out_p) * 4)
    x_bytes = tm * in_p * x_in.dtype.itemsize
    o_bytes = tm * out_p * jnp.dtype(out_dtype).itemsize
    i_bytes = tm * (sh_p + pe_p) * 4
    footprint = 2 * (w_bytes + x_bytes + o_bytes + i_bytes)
    vmem_limit = int(min(max(footprint + (4 << 20), 16 << 20), 48 << 20))

    flops = 2 * batch_p * (in_p * sh_p + sh_p * pe_p + pe_p * out_p)
    bytes_accessed = (x_in.size * x_in.dtype.itemsize          # activations in
                      + w_bytes                                # one task's weights
                      + batch_p * out_p * jnp.dtype(out_dtype).itemsize)  # out

    out_padded = pl.pallas_call(
        _multitask_mlp_kernel,
        out_shape=jax.ShapeDtypeStruct((batch_p, out_p), out_dtype),
        grid_spec=grid_spec,
        compiler_params=pltpu.CompilerParams(
            dimension_semantics=("parallel",),
            vmem_limit_bytes=vmem_limit,
        ),
        cost_estimate=pl.CostEstimate(
            flops=flops, transcendentals=0, bytes_accessed=bytes_accessed),
    )(task_idx, x_in, w1, b1, w2, b2, w3, b3)

    return out_padded[:batch, :out_dim]


def init_params(key, in_dim, shared_dim, pers_dim, out_dim, n_tasks):
    """Deterministic synthetic parameters (PyTorch Linear shapes, stored transposed)."""
    def linear(k, fan_in, fan_out):
        kw, kb = jax.random.split(k)
        bound = 1.0 / jnp.sqrt(fan_in)
        w = jax.random.uniform(kw, (fan_in, fan_out), jnp.float32, -bound, bound)
        b = jax.random.uniform(kb, (1, fan_out), jnp.float32, -bound, bound)
        return w, b

    keys = jax.random.split(key, 1 + 2 * n_tasks)
    return {
        "shared_hidden": linear(keys[0], in_dim, shared_dim),
        "personalized_hidden": [
            linear(keys[1 + t], shared_dim, pers_dim) for t in range(n_tasks)
        ],
        "output_heads": [
            linear(keys[1 + n_tasks + t], pers_dim, out_dim) for t in range(n_tasks)
        ],
    }


def reference_forward(x, params, task_id):
    """Exact f32 PyTorch forward."""
    w1, b1 = params["shared_hidden"]
    w2, b2 = params["personalized_hidden"][task_id - 1]
    w3, b3 = params["output_heads"][task_id - 1]
    h = jnp.maximum(x @ w1 + b1, 0.0)
    h = jnp.maximum(h @ w2 + b2, 0.0)
    return h @ w3 + b3


if __name__ == "__main__":
    key = jax.random.PRNGKey(0)
    kx, kp, kx2 = jax.random.split(key, 3)

    batch, in_dim, shared_dim, pers_dim, out_dim, n_tasks = 8, 32, 64, 32, 8, 3
    x = jax.random.normal(kx, (batch, in_dim), jnp.float32)
    params = init_params(kp, in_dim, shared_dim, pers_dim, out_dim, n_tasks)
    prepared = prepare_params(params)

    task_id = 2
    out = jax.block_until_ready(multitask_nn_forward(x, prepared, task_id))
    assert out.shape == (batch, out_dim)

    # Reference 1: same math as the kernel (bf16 matmul operands, f32 accumulate).
    w1, b1 = params["shared_hidden"]
    w2, b2 = params["personalized_hidden"][task_id - 1]
    w3, b3 = params["output_heads"][task_id - 1]
    bf = jnp.bfloat16
    h = jnp.maximum(jnp.dot(x.astype(bf), w1.astype(bf),
                            preferred_element_type=jnp.float32) + b1, 0.0)
    h = jnp.maximum(jnp.dot(h.astype(bf), w2.astype(bf),
                            preferred_element_type=jnp.float32) + b2, 0.0)
    ref_bf16 = jnp.dot(h.astype(bf), w3.astype(bf),
                       preferred_element_type=jnp.float32) + b3
    assert jnp.allclose(out, ref_bf16, atol=1e-3, rtol=1e-3)

    # Reference 2: exact PyTorch f32 forward (loose tolerance, bf16 MXU operands).
    ref_f32 = reference_forward(x, params, task_id)
    assert jnp.allclose(out, ref_f32, atol=1e-1, rtol=5e-2)

    # Multi-tile path (adaptive tm, grid length >= 2) and every task head.
    xb = jax.random.normal(kx2, (272, in_dim), jnp.float32)
    for t in range(1, n_tasks + 1):
        ob = jax.block_until_ready(multitask_nn_forward(xb, prepared, t))
        assert ob.shape == (272, out_dim)
        assert jnp.allclose(ob, reference_forward(xb, params, t),
                            atol=1e-1, rtol=5e-2)

    print("KERNEL_OK")
</pallas_src>

<mosaic_0001>
module attributes {stable_mosaic.version = 11 : i64} {
  func.func @_multitask_mlp_kernel(%arg0: i32, %arg1: memref<1xi32, #tpu.memory_space<smem>>, %arg2: memref<16x128xbf16, #tpu.memory_space<vmem>>, %arg3: memref<128x128xbf16, #tpu.memory_space<vmem>>, %arg4: memref<1x128xf32, #tpu.memory_space<vmem>>, %arg5: memref<1x128x128xbf16, #tpu.memory_space<vmem>>, %arg6: memref<1x1x128xf32, #tpu.memory_space<vmem>>, %arg7: memref<1x128x128xbf16, #tpu.memory_space<vmem>>, %arg8: memref<1x1x128xf32, #tpu.memory_space<vmem>>, %arg9: memref<16x128xf32, #tpu.memory_space<vmem>>) attributes {dimension_semantics = [#tpu.dimension_semantics<parallel>], iteration_bounds = array<i64: 1>, scalar_prefetch = 1 : i64, scratch_operands = 0 : i64, tpu.core_type = #tpu.core_type<tc>, window_params = [{transform_indices = @transform_0, window_bounds = array<i64: 16, 128>}, {pipeline_mode = #tpu.pipeline_mode<synchronous>, transform_indices = @transform_1, window_bounds = array<i64: 128, 128>}, {pipeline_mode = #tpu.pipeline_mode<synchronous>, transform_indices = @transform_2, window_bounds = array<i64: 1, 128>}, {transform_indices = @transform_3, window_bounds = array<i64: 1, 128, 128>}, {transform_indices = @transform_4, window_bounds = array<i64: 1, 1, 128>}, {transform_indices = @transform_5, window_bounds = array<i64: 1, 128, 128>}, {transform_indices = @transform_6, window_bounds = array<i64: 1, 1, 128>}, {transform_indices = @transform_7, window_bounds = array<i64: 16, 128>}]} {
    %c0 = arith.constant 0 : index
    %c0_0 = arith.constant 0 : index
    %0 = vector.load %arg2[%c0, %c0_0] : memref<16x128xbf16, #tpu.memory_space<vmem>>, vector<16x128xbf16>
    %c0_1 = arith.constant 0 : index
    %c0_2 = arith.constant 0 : index
    %1 = vector.load %arg3[%c0_1, %c0_2] : memref<128x128xbf16, #tpu.memory_space<vmem>>, vector<128x128xbf16>
    %cst = arith.constant dense<0.000000e+00> : vector<16x128xf32>
    %2 = tpu.matmul %0, %1, %cst {dimension_numbers = #tpu.dot_dimension_numbers<[1], [0], [0], [1], [0, 0, 1, 1], [], []>} : vector<16x128xbf16>, vector<128x128xbf16>, vector<16x128xf32> -> vector<16x128xf32>
    %c0_3 = arith.constant 0 : index
    %c0_4 = arith.constant 0 : index
    %3 = vector.load %arg4[%c0_3, %c0_4] : memref<1x128xf32, #tpu.memory_space<vmem>>, vector<1x128xf32>
    %4 = vector.broadcast %3 : vector<1x128xf32> to vector<16x128xf32>
    %5 = arith.addf %2, %4 : vector<16x128xf32>
    %cst_5 = arith.constant 0.000000e+00 : f32
    %6 = vector.broadcast %cst_5 : f32 to vector<16x128xf32>
    %7 = arith.maximumf %5, %6 : vector<16x128xf32>
    %8 = arith.truncf %7 : vector<16x128xf32> to vector<16x128xbf16>
    %c0_6 = arith.constant 0 : index
    %c0_7 = arith.constant 0 : index
    %c0_8 = arith.constant 0 : index
    %9 = vector.load %arg5[%c0_6, %c0_7, %c0_8] : memref<1x128x128xbf16, #tpu.memory_space<vmem>>, vector<1x128x128xbf16>
    %10 = vector.shape_cast %9 : vector<1x128x128xbf16> to vector<128x128xbf16>
    %cst_9 = arith.constant dense<0.000000e+00> : vector<16x128xf32>
    %11 = tpu.matmul %8, %10, %cst_9 {dimension_numbers = #tpu.dot_dimension_numbers<[1], [0], [0], [1], [0, 0, 1, 1], [], []>} : vector<16x128xbf16>, vector<128x128xbf16>, vector<16x128xf32> -> vector<16x128xf32>
    %c0_10 = arith.constant 0 : index
    %c0_11 = arith.constant 0 : index
    %c0_12 = arith.constant 0 : index
    %12 = vector.load %arg6[%c0_10, %c0_11, %c0_12] : memref<1x1x128xf32, #tpu.memory_space<vmem>>, vector<1x1x128xf32>
    %13 = vector.shape_cast %12 : vector<1x1x128xf32> to vector<1x128xf32>
    %14 = vector.broadcast %13 : vector<1x128xf32> to vector<16x128xf32>
    %15 = arith.addf %11, %14 : vector<16x128xf32>
    %cst_13 = arith.constant 0.000000e+00 : f32
    %16 = vector.broadcast %cst_13 : f32 to vector<16x128xf32>
    %17 = arith.maximumf %15, %16 : vector<16x128xf32>
    %18 = arith.truncf %17 : vector<16x128xf32> to vector<16x128xbf16>
    %c0_14 = arith.constant 0 : index
    %c0_15 = arith.constant 0 : index
    %c0_16 = arith.constant 0 : index
    %19 = vector.load %arg7[%c0_14, %c0_15, %c0_16] : memref<1x128x128xbf16, #tpu.memory_space<vmem>>, vector<1x128x128xbf16>
    %20 = vector.shape_cast %19 : vector<1x128x128xbf16> to vector<128x128xbf16>
    %cst_17 = arith.constant dense<0.000000e+00> : vector<16x128xf32>
    %21 = tpu.matmul %18, %20, %cst_17 {dimension_numbers = #tpu.dot_dimension_numbers<[1], [0], [0], [1], [0, 0, 1, 1], [], []>} : vector<16x128xbf16>, vector<128x128xbf16>, vector<16x128xf32> -> vector<16x128xf32>
    %c0_18 = arith.constant 0 : index
    %c0_19 = arith.constant 0 : index
    %c0_20 = arith.constant 0 : index
    %22 = vector.load %arg8[%c0_18, %c0_19, %c0_20] : memref<1x1x128xf32, #tpu.memory_space<vmem>>, vector<1x1x128xf32>
    %23 = vector.shape_cast %22 : vector<1x1x128xf32> to vector<1x128xf32>
    %24 = vector.broadcast %23 : vector<1x128xf32> to vector<16x128xf32>
    %25 = arith.addf %21, %24 : vector<16x128xf32>
    %c0_21 = arith.constant 0 : index
    %c0_22 = arith.constant 0 : index
    %26 = vector.load %arg9[%c0_21, %c0_22] : memref<16x128xf32, #tpu.memory_space<vmem>>, vector<16x128xf32>
    tpu.vector_store %arg9[%c0_21, %c0_22], %25 {strides = array<i32>} : memref<16x128xf32, #tpu.memory_space<vmem>>, vector<16x128xf32>,
    return
  }
  func.func @transform_0(%arg0: i32, %arg1: memref<1xi32, #tpu.memory_space<smem>>) -> (i32, i32) {
    %c0_i32 = arith.constant 0 : i32
    %c0_i32_0 = arith.constant 0 : i32
    return %arg0, %c0_i32 : i32, i32
  }
  func.func @transform_1(%arg0: i32, %arg1: memref<1xi32, #tpu.memory_space<smem>>) -> (i32, i32) {
    %c0_i32 = arith.constant 0 : i32
    %c0_i32_0 = arith.constant 0 : i32
    %c0_i32_1 = arith.constant 0 : i32
    return %c0_i32, %c0_i32_0 : i32, i32
  }
  func.func @transform_2(%arg0: i32, %arg1: memref<1xi32, #tpu.memory_space<smem>>) -> (i32, i32) {
    %c0_i32 = arith.constant 0 : i32
    %c0_i32_0 = arith.constant 0 : i32
    %c0_i32_1 = arith.constant 0 : i32
    return %c0_i32, %c0_i32_0 : i32, i32
  }
  func.func @transform_3(%arg0: i32, %arg1: memref<1xi32, #tpu.memory_space<smem>>) -> (i32, i32, i32) {
    %c0 = arith.constant 0 : index
    %0 = memref.load %arg1[%c0] : memref<1xi32, #tpu.memory_space<smem>>
    %c0_i32 = arith.constant 0 : i32
    %c0_i32_0 = arith.constant 0 : i32
    %c0_i32_1 = arith.constant 0 : i32
    return %0, %c0_i32, %c0_i32_0 : i32, i32, i32
  }
  func.func @transform_4(%arg0: i32, %arg1: memref<1xi32, #tpu.memory_space<smem>>) -> (i32, i32, i32) {
    %c0 = arith.constant 0 : index
    %0 = memref.load %arg1[%c0] : memref<1xi32, #tpu.memory_space<smem>>
    %c0_i32 = arith.constant 0 : i32
    %c0_i32_0 = arith.constant 0 : i32
    %c0_i32_1 = arith.constant 0 : i32
    return %0, %c0_i32, %c0_i32_0 : i32, i32, i32
  }
  func.func @transform_5(%arg0: i32, %arg1: memref<1xi32, #tpu.memory_space<smem>>) -> (i32, i32, i32) {
    %c0 = arith.constant 0 : index
    %0 = memref.load %arg1[%c0] : memref<1xi32, #tpu.memory_space<smem>>
    %c0_i32 = arith.constant 0 : i32
    %c0_i32_0 = arith.constant 0 : i32
    %c0_i32_1 = arith.constant 0 : i32
    return %0, %c0_i32, %c0_i32_0 : i32, i32, i32
  }
  func.func @transform_6(%arg0: i32, %arg1: memref<1xi32, #tpu.memory_space<smem>>) -> (i32, i32, i32) {
    %c0 = arith.constant 0 : index
    %0 = memref.load %arg1[%c0] : memref<1xi32, #tpu.memory_space<smem>>
    %c0_i32 = arith.constant 0 : i32
    %c0_i32_0 = arith.constant 0 : i32
    %c0_i32_1 = arith.constant 0 : i32
    return %0, %c0_i32, %c0_i32_0 : i32, i32, i32
  }
  func.func @transform_7(%arg0: i32, %arg1: memref<1xi32, #tpu.memory_space<smem>>) -> (i32, i32) {
    %c0_i32 = arith.constant 0 : i32
    %c0_i32_0 = arith.constant 0 : i32
    return %arg0, %c0_i32 : i32, i32
  }
}

</mosaic_0001>

<bundles_post_ra>
// kernel: tpu_custom_call.1
= control target key start
LH: loop header
LB: loop body
LE: loop exit
PB: predicated region body
PF: predicated region fallthrough
CT: control target
= control target key end

     0   :  { %14 = vsyncpa [#allocation5], 0  ;;  %s960_s0 = inlined_call_operand.<no memory space> [shape: s32[1], index: 0, kind: input, shape index: {}]   ;;  %s961_s1 = inlined_call_operand.hbm [shape: bf16[16,128], index: 1, kind: input, shape index: {}]   ;;  %s962_s2 = inlined_call_operand.hbm [shape: bf16[128,128], index: 2, kind: input, shape index: {}]   ;;  %s963_s3 = inlined_call_operand.vmem [shape: f32[1,128], index: 3, kind: input, shape index: {}]   ;;  %s964_s4 = inlined_call_operand.hbm [shape: bf16[3,128,128], index: 4, kind: input, shape index: {}]   ;;  %s965_s5 = inlined_call_operand.vmem [shape: f32[3,1,128], index: 5, kind: input, shape index: {}]   ;;  %s966_s6 = inlined_call_operand.hbm [shape: bf16[3,128,128], index: 6, kind: input, shape index: {}]   ;;  %s967_s7 = inlined_call_operand.vmem [shape: f32[3,1,128], index: 7, kind: input, shape index: {}]   ;;  %s968_s8 = inlined_call_operand.hbm [shape: f32[16,128], index: 8, kind: output, shape index: {}]  }
   0x1   :  { %15 = vsyncpa [#allocation8], 0 }
   0x2   :  { %16 = vsyncpa [#allocation11], 0 }
   0x3   :  { %17 = vsyncpa [#allocation6], 0  ;;  %s783_s27 = smov [#allocation7]   ;;  %s784_s29 = smov [#allocation4]  }
   0x4   :  { %s35_s28 = sshll.u32 %s783_s27, 4  ;;  %s23_s30 = sshll.u32 %s784_s29, 4  ;;  %s36_s28 = int_to_ptr.vmem [resolvable:$true] %s35_s28  ;;  %s839_s30 = int_to_ptr.vmem [resolvable:$true] %s23_s30 }
   0x5   :  { %s661_s11 = scalar_lea.hbm %s962_s2, 1024 }
   0x6   :  { %p662_p0 = scmp.ne.s32.totalorder %s962_s2, %s661_s11  ;;  %p665_p1 = scmp.lt.u32.totalorder %s661_s11, %s962_s2 }
   0x8   :  { %p667_p2 = pnand %p665_p1, %p662_p0 }
   0xa   :  { %670 = shalt.err (!%p667_p2)
}
   0xb   :  { %s671_s16 = scalar_lea.vmem %s36_s28, 1024  ;;  %p676_p4 = scmp.lt.s32.totalorder %s36_s28, %s36_s28 }
   0xc   :  { %p672_p3 = scmp.ne.s32.totalorder %s36_s28, %s671_s16  ;;  %p677_p5 = scmp.lt.s32.totalorder %s671_s16, %s671_s16 }
   0xe   :  { %p678_p6 = por %p677_p5, %p676_p4 }
  0x10   :  { %p679_p7 = pnand %p678_p6, %p672_p3 }
  0x12   :  { %682 = shalt.err (!%p679_p7)
}
  0x13   :  { %s785_s17 = smov 64   ;;  %s786_s18 = smov 4  }
  0x14   :  { %41 = dma.hbm_to_vmem [thread:$0]  %s962_s2, 1024, %s36_s28, [#allocation8], %s785_s17, %s785_s17, %s786_s18  }
  0x15   :  { %s683_s23 = scalar_lea.hbm %s961_s1, 128 }
  0x16   :  { %p684_p8 = scmp.ne.s32.totalorder %s961_s1, %s683_s23  ;;  %p687_p9 = scmp.lt.u32.totalorder %s683_s23, %s961_s1 }
  0x18   :  { %p689_p10 = pnand %p687_p9, %p684_p8 }
  0x1a   :  { %692 = shalt.err (!%p689_p10)
}
  0x1b   :  { %s693_s29 = scalar_lea.vmem %s839_s30, 128  ;;  %p698_p12 = scmp.lt.s32.totalorder %s839_s30, %s839_s30 }
  0x1c   :  { %p694_p11 = scmp.ne.s32.totalorder %s839_s30, %s693_s29  ;;  %p699_p13 = scmp.lt.s32.totalorder %s693_s29, %s693_s29 }
  0x1e   :  { %p700_p0 = por %p699_p13, %p698_p12 }
  0x20   :  { %p701_p1 = pnand %p700_p0, %p694_p11 }
  0x22   :  { %704 = shalt.err (!%p701_p1)
}
  0x23   :  { %29 = dma.hbm_to_vmem [thread:$0]  %s961_s1, 128, %s839_s30, [#allocation5], %s785_s17, %s785_s17, %s786_s18  }
  0x24   :  { %s536_s11 = sshll.u32 %s960_s0, 10  ;;  %s787_s15 = smov [#allocation9]  }
  0x25   :  { %s52_s14 = scalar_lea.hbm %s964_s4, %s536_s11  ;;  %s53_s16 = sshll.u32 %s787_s15, 4  ;;  %s54_s16 = int_to_ptr.vmem [resolvable:$true] %s53_s16 }
  0x26   :  { %s705_s19 = scalar_lea.hbm %s52_s14, 1024  ;;  %s707_s22 = scalar_lea.hbm %s964_s4, 3072 }
  0x27   :  { %p706_p2 = scmp.ne.s32.totalorder %s52_s14, %s705_s19  ;;  %p708_p3 = scmp.lt.u32.totalorder %s52_s14, %s964_s4 }
  0x28   :  { %p709_p4 = scmp.lt.u32.totalorder %s707_s22, %s705_s19  ;;  %p711_p6 = scmp.lt.u32.totalorder %s705_s19, %s52_s14 }
  0x2a   :  { %p710_p5 = por %p709_p4, %p708_p3 }
  0x2c   :  { %p712_p7 = por %p711_p6, %p710_p5 }
  0x2e   :  { %p713_p8 = pnand %p712_p7, %p706_p2 }
  0x30   :  { %716 = shalt.err (!%p713_p8)
}
  0x31   :  { %s717_s1 = scalar_lea.vmem %s54_s16, 1024  ;;  %p722_p10 = scmp.lt.s32.totalorder %s54_s16, %s54_s16 }
  0x32   :  { %p718_p9 = scmp.ne.s32.totalorder %s54_s16, %s717_s1  ;;  %p723_p11 = scmp.lt.s32.totalorder %s717_s1, %s717_s1 }
  0x34   :  { %p724_p12 = por %p723_p11, %p722_p10 }
  0x36   :  { %p725_p13 = pnand %p724_p12, %p718_p9 }
  0x38   :  { %728 = shalt.err (!%p725_p13)
}
  0x39   :  { %59 = dma.hbm_to_vmem [thread:$0]  %s52_s14, 1024, %s54_s16, [#allocation8], %s785_s17, %s785_s17, %s786_s18  }
  0x3a   :  { %s75_s4 = scalar_lea.hbm %s966_s6, %s536_s11  ;;  %s788_s26 = smov [#allocation10]  }
  0x3b   :  { %s76_s27 = sshll.u32 %s788_s26, 4  ;;  %s729_s29 = scalar_lea.hbm %s75_s4, 1024  ;;  %s77_s27 = int_to_ptr.vmem [resolvable:$true] %s76_s27 }
  0x3c   :  { %p730_p0 = scmp.ne.s32.totalorder %s75_s4, %s729_s29  ;;  %s731_s9 = scalar_lea.hbm %s966_s6, 3072 }
  0x3d   :  { %p732_p1 = scmp.lt.u32.totalorder %s75_s4, %s966_s6  ;;  %p733_p2 = scmp.lt.u32.totalorder %s731_s9, %s729_s29 }
  0x3e   :  { %p735_p4 = scmp.lt.u32.totalorder %s729_s29, %s75_s4 }
  0x3f   :  { %p734_p3 = por %p733_p2, %p732_p1 }
  0x41   :  { %p736_p5 = por %p735_p4, %p734_p3 }
  0x43   :  { %p737_p6 = pnand %p736_p5, %p730_p0 }
  0x45   :  { %740 = shalt.err (!%p737_p6)
}
  0x46   :  { %s741_s11 = scalar_lea.vmem %s77_s27, 1024  ;;  %p746_p8 = scmp.lt.s32.totalorder %s77_s27, %s77_s27 }
  0x47   :  { %p742_p7 = scmp.ne.s32.totalorder %s77_s27, %s741_s11  ;;  %p747_p9 = scmp.lt.s32.totalorder %s741_s11, %s741_s11 }
  0x49   :  { %p748_p10 = por %p747_p9, %p746_p8 }
  0x4b   :  { %p749_p11 = pnand %p748_p10, %p742_p7 }
  0x4d   :  { %752 = shalt.err (!%p749_p11)
}
  0x4e   :  { %82 = dma.hbm_to_vmem [thread:$0]  %s75_s4, 1024, %s77_s27, [#allocation11], %s785_s17, %s785_s17, %s786_s18  }
  0x4f   :  { %775 = dma.done.wait [#allocation5], 128  }
  0x50   :  { %776 = vsyncadd [#allocation5], 4294967168 }
  0x51   :  { %777 = dma.done.wait [#allocation8], 2048  }
  0x52   :  { %778 = vsyncadd [#allocation8], 4294965248 }
  0x53   :  { %779 = dma.done.wait [#allocation11], 1024  }
  0x54   :  { %780 = vsyncadd [#allocation11], 4294966272  ;;  %v789_v0 = vmov 0.0   ;;  %vm790_vm0 = vmmov 0   ;;  %v636_v1 = vld [vmem:[#allocation7] sm:$0xff]   ;;  %v637_v2 = vld [vmem:[#allocation7 + $0x8] sm:$0xff]  }
  0x55   :  { %565 = vmatprep.subr.bf16.mxu0 %v789_v0  ;;  %581 = vmatprep.mubr.msk.bf16.mxu0 %vm790_vm0, %v789_v0  ;;  %v638_v3 = vld [vmem:[#allocation7 + $0x10] sm:$0xff]   ;;  %v645_v4 = vld [vmem:[#allocation9] sm:$0xff]   ;;  %v639_v5 = vld [vmem:[#allocation7 + $0x18] sm:$0xff]   ;;  %p112_p12 = scmp.lt.s32.totalorder %s960_s0, 2  ;;  %s791_s23 = smov [#allocation12]  }
  0x56   :  { %585 = vmatprep.subr.bf16.mxu1 %v789_v0  ;;  %601 = vmatprep.mubr.msk.bf16.mxu1 %vm790_vm0, %v789_v0  ;;  %v646_v6 = vld [vmem:[#allocation9 + $0x8] sm:$0xff]   ;;  %v640_v7 = vld [vmem:[#allocation7 + $0x20] sm:$0xff]   ;;  %v647_v8 = vld [vmem:[#allocation9 + $0x10] sm:$0xff]   ;;  %s480_s24 = sshll.u32 %s791_s23, 4  ;;  %s481_s24 = int_to_ptr.vmem [resolvable:$true] %s480_s24 }
  0x57   :  { %566 = vmatpush3.bf16.msra.mxu0 %v636_v1  ;;  %586 = vmatpush3.bf16.msra.mxu1 %v645_v4  ;;  %v641_v9 = vld [vmem:[#allocation7 + $0x28] sm:$0xff]   ;;  %v648_v10 = vld [vmem:[#allocation9 + $0x18] sm:$0xff]   ;;  %v642_v11 = vld [vmem:[#allocation7 + $0x30] sm:$0xff]   ;;  %s970_s0 = smov (!%p112_p12, %s960_s0), 2  ;;  %p758_p0 = scmp.lt.s32.totalorder %s481_s24, %s481_s24 }
  0x58   :  { %567 = vmatprep.subr.bf16.mxu0 %v789_v0  ;;  %587 = vmatprep.subr.bf16.mxu1 %v789_v0  ;;  %v649_v12 = vld [vmem:[#allocation9 + $0x20] sm:$0xff]   ;;  %v643_v13 = vld [vmem:[#allocation7 + $0x38] sm:$0xff]   ;;  %v650_v14 = vld [vmem:[#allocation9 + $0x28] sm:$0xff]   ;;  %s114_s19 = scalar_lea.vmem %s965_s5, %s970_s0  ;;  %s120_s22 = scalar_lea.vmem %s967_s7, %s970_s0 }
  0x59   :  { %v644_v15 = vld [vmem:[#allocation4] sm:$0xff]   ;;  %v651_v16 = vld [vmem:[#allocation9 + $0x30] sm:$0xff]   ;;  %v653_v18 = vld [vmem:[#allocation10] sm:$0xff]   ;;  %s753_s5 = scalar_lea.vmem %s481_s24, 256 }
  0x5a   :  { %v652_v17 = vld [vmem:[#allocation9 + $0x38] sm:$0xff]   ;;  %v654_v19 = vld [vmem:[#allocation10 + $0x8] sm:$0xff]   ;;  %v655_v20 = vld [vmem:[#allocation10 + $0x10] sm:$0xff]   ;;  %p754_p13 = scmp.ne.s32.totalorder %s481_s24, %s753_s5  ;;  %p759_p1 = scmp.lt.s32.totalorder %s753_s5, %s753_s5 }
  0x5b   :  { %568 = vmatpush3.bf16.msra.mxu0 %v637_v2  ;;  %588 = vmatpush3.bf16.msra.mxu1 %v646_v6  ;;  %v656_v21 = vld [vmem:[#allocation10 + $0x18] sm:$0xff]   ;;  %v657_v22 = vld [vmem:[#allocation10 + $0x20] sm:$0xff]   ;;  %v658_v23 = vld [vmem:[#allocation10 + $0x28] sm:$0xff]  }
  0x5c   :  { %569 = vmatprep.subr.bf16.mxu0 %v789_v0  ;;  %589 = vmatprep.subr.bf16.mxu1 %v789_v0  ;;  %v508_v24 = vld [vmem:[%s963_s3] ss:$0 sm:$0xff]  ;;  %v659_v34 = vld [vmem:[#allocation10 + $0x30] sm:$0xff]   ;;  %p760_p2 = por %p759_p1, %p758_p0 }
  0x5d   :  { %v660_v35 = vld [vmem:[#allocation10 + $0x38] sm:$0xff]  }
  0x5e   :  { %v518_v36 = vld [vmem:[%s114_s19] ss:$0 sm:$0xff]  ;;  %p761_p3 = pnand %p760_p2, %p754_p13 }
  0x5f   :  { %570 = vmatpush3.bf16.msra.mxu0 %v638_v3  ;;  %590 = vmatpush3.bf16.msra.mxu1 %v647_v8  ;;  %v527_v46 = vld [vmem:[%s120_s22] ss:$0 sm:$0xff] }
  0x60   :  { %571 = vmatprep.subr.bf16.mxu0 %v789_v0  ;;  %591 = vmatprep.subr.bf16.mxu1 %v789_v0 }
  0x63   :  { %572 = vmatpush3.bf16.msra.mxu0 %v639_v5  ;;  %592 = vmatpush3.bf16.msra.mxu1 %v648_v10 }
  0x64   :  { %573 = vmatprep.subr.bf16.mxu0 %v789_v0  ;;  %593 = vmatprep.subr.bf16.mxu1 %v789_v0 }
  0x67   :  { %574 = vmatpush3.bf16.msra.mxu0 %v640_v7  ;;  %594 = vmatpush3.bf16.msra.mxu1 %v649_v12 }
  0x68   :  { %575 = vmatprep.subr.bf16.mxu0 %v789_v0  ;;  %595 = vmatprep.subr.bf16.mxu1 %v789_v0 }
  0x6b   :  { %576 = vmatpush3.bf16.msra.mxu0 %v641_v9  ;;  %596 = vmatpush3.bf16.msra.mxu1 %v650_v14 }
  0x6c   :  { %577 = vmatprep.subr.bf16.mxu0 %v789_v0  ;;  %597 = vmatprep.subr.bf16.mxu1 %v789_v0 }
  0x6f   :  { %578 = vmatpush3.bf16.msra.mxu0 %v642_v11  ;;  %598 = vmatpush3.bf16.msra.mxu1 %v651_v16 }
  0x70   :  { %579 = vmatprep.subr.bf16.mxu0 %v789_v0  ;;  %599 = vmatprep.subr.bf16.mxu1 %v789_v0 }
  0x73   :  { %580 = vmatpush3.bf16.msra.mxu0 %v643_v13  ;;  %600 = vmatpush3.bf16.msra.mxu1 %v652_v17 }
  0x74   :  { %605 = vmatprep.subr.bf16.mxu0 %v789_v0 }
  0x76   :  { %582 = vmatmul.mubr.bf16.vlgmr.msra.gmra.mrb[0].mxu0 %v644_v15 }
  0x77   :  { %621 = vmatprep.mubr.msk.bf16.mxu0 %vm790_vm0, %v789_v0  ;;  %606 = vmatpush3.bf16.msra.mxu0 %v653_v18 }
  0x78   :  { %607 = vmatprep.subr.bf16.mxu0 %v789_v0 }
  0x7b   :  { %608 = vmatpush3.bf16.msra.mxu0 %v654_v19 }
  0x7c   :  { %609 = vmatprep.subr.bf16.mxu0 %v789_v0 }
  0x7f   :  { %610 = vmatpush3.bf16.msra.mxu0 %v655_v20 }
  0x80   :  { %611 = vmatprep.subr.bf16.mxu0 %v789_v0 }
  0x83   :  { %612 = vmatpush3.bf16.msra.mxu0 %v656_v21 }
  0x84   :  { %613 = vmatprep.subr.bf16.mxu0 %v789_v0 }
  0x87   :  { %614 = vmatpush3.bf16.msra.mxu0 %v657_v22 }
  0x88   :  { %615 = vmatprep.subr.bf16.mxu0 %v789_v0 }
  0x8b   :  { %616 = vmatpush3.bf16.msra.mxu0 %v658_v23 }
  0x8c   :  { %617 = vmatprep.subr.bf16.mxu0 %v789_v0 }
  0x8f   :  { %618 = vmatpush3.bf16.msra.mxu0 %v659_v34 }
  0x90   :  { %619 = vmatprep.subr.bf16.mxu0 %v789_v0 }
  0x93   :  { %620 = vmatpush3.bf16.msra.mxu0 %v660_v35 }
 0x149   :  { %v236_v25 = vpop.f32.mrb[0].mxu0 }
 0x14a   :  { %v237_v26 = vadd.f32 %v508_v24, %v236_v25  ;;  %v583_v27 = vpop.f32.mrb[1].mxu0 }
 0x14b   :  { %v239_v28 = vpop.f32.mrb[2].mxu0 }
 0x14c   :  { %v240_v29 = vadd.f32 %v508_v24, %v239_v28  ;;  %v584_v30 = vpop.f32.mrb[3].mxu0  ;;  %v243_v31 = vmax.f32 %v237_v26, 0.0 }
 0x14e   :  { %v244_v32 = vmax.f32 %v240_v29, 0.0 }
 0x150   :  { %v245_v33 = vpack.c.bf16 %v244_v32, %v243_v31 }
 0x152   :  { %602 = vmatmul.mubr.bf16.vlgmr.msra.gmra.mrb[0].mxu1 %v245_v33 }
 0x225   :  { %v351_v37 = vpop.f32.mrb[0].mxu1 }
 0x226   :  { %v352_v38 = vadd.f32 %v518_v36, %v351_v37  ;;  %v603_v39 = vpop.f32.mrb[1].mxu1 }
 0x227   :  { %v354_v40 = vpop.f32.mrb[2].mxu1 }
 0x228   :  { %v355_v41 = vadd.f32 %v518_v36, %v354_v40  ;;  %v604_v42 = vpop.f32.mrb[3].mxu1  ;;  %v358_v43 = vmax.f32 %v352_v38, 0.0 }
 0x22a   :  { %v359_v44 = vmax.f32 %v355_v41, 0.0 }
 0x22c   :  { %v360_v45 = vpack.c.bf16 %v359_v44, %v358_v43 }
 0x22e   :  { %622 = vmatmul.mubr.bf16.vlgmr.msra.gmra.mrb[4].mxu0 %v360_v45 }
 0x301   :  { %v466_v47 = vpop.f32.mrb[4].mxu0 }
 0x302   :  { %v467_v48 = vadd.f32 %v527_v46, %v466_v47  ;;  %v623_v49 = vpop.f32.mrb[5].mxu0 }
 0x303   :  { %v469_v50 = vpop.f32.mrb[6].mxu0 }
 0x304   :  { %473 = vst [vmem:[#allocation12] sm:$0xff] %v467_v48  ;;  %v470_v51 = vadd.f32 %v527_v46, %v469_v50  ;;  %v624_v52 = vpop.f32.mrb[7].mxu0 }
 0x306   :  { %474 = vst [vmem:[#allocation12 + $0x8] sm:$0xff] %v470_v51 }
 0x307   :  { %764 = shalt.err (!%p761_p3)
}
 0x308   :  { %s765_s1 = scalar_lea.hbm %s968_s8, 256 }
 0x309   :  { %p766_p4 = scmp.ne.s32.totalorder %s968_s8, %s765_s1  ;;  %p769_p5 = scmp.lt.u32.totalorder %s765_s1, %s968_s8 }
 0x30b   :  { %p771_p6 = pnand %p769_p5, %p766_p4 }
 0x30d   :  { %774 = shalt.err (!%p771_p6)
}
 0x30e   :  { %s792_s27 = smov 128   ;;  %s793_s29 = smov 8  }
 0x30f   :  { %486 = dma.vmem_to_hbm [thread:$0]  %s481_s24, 256, %s968_s8, [#allocation6], %s792_s27, %s792_s27, %s793_s29  }
 0x310   :  { %781 = dma.done.wait [#allocation6], 256  }
 0x311   :  { %782 = vsyncadd [#allocation6], 4294967040 }
 0x312   :  { %490 = vsyncpa [#allocation5], 1 }
 0x313   :  { %491 = vsyncpa [#allocation8], 1 }
 0x314   :  { %492 = vsyncpa [#allocation11], 1 }
 0x315   :  { %493 = vsyncpa [#allocation6], 1 }

</bundles_post_ra>
